<compile_context>
chip_gen: v5e
topology: v5e:2x2
jax: 0.10.0
libtpu: 0.0.40
codegen_flags: <defaults>
</compile_context>

<pallas_src>
import functools

import jax
import jax.numpy as jnp
from jax.experimental import pallas as pl
from jax.experimental.pallas import tpu as pltpu


def _round_up(x, m):
    return (x + m - 1) // m * m


# --------------------------------------------------------------------------
# Stage 1: time-parallel projection (Linear -> relu(tanh) -> @ W_ih^T + b_ih)
# --------------------------------------------------------------------------
def _proj_kernel(x_ref, wl_ref, bl_ref, wih_ref, bih_ref, gi_ref):
    pre = jnp.dot(x_ref[...], wl_ref[...], preferred_element_type=jnp.float32)
    act = jnp.maximum(jnp.tanh(pre + bl_ref[...]), 0.0)
    gi_ref[...] = (
        jnp.dot(act, wih_ref[...], preferred_element_type=jnp.float32)
        + bih_ref[...]
    )


# --------------------------------------------------------------------------
# Stage 2: sequential GRU recurrence over blocks of TB timesteps
# --------------------------------------------------------------------------
def _gru_kernel(gi_ref, h0_ref, whh_ref, bhh_ref, out_ref, hn_ref, h_scr,
                *, hidden_p, t_block, t_total, needs_mask):
    blk = pl.program_id(0)

    @pl.when(blk == 0)
    def _():
        h_scr[...] = h0_ref[...]

    H = hidden_p
    whh = whh_ref[...]          # hoisted: loaded once per grid step
    bhh = bhh_ref[...]

    def step(i, h):
        gi = gi_ref[i]                                     # (B_p, 3*H_p)
        gh = jnp.dot(h, whh, preferred_element_type=jnp.float32) + bhh
        # PyTorch GRU gate order: [r, z, n]; slices are 128-lane aligned.
        r = jax.nn.sigmoid(gi[:, 0 * H:1 * H] + gh[:, 0 * H:1 * H])
        z = jax.nn.sigmoid(gi[:, 1 * H:2 * H] + gh[:, 1 * H:2 * H])
        n = jnp.tanh(gi[:, 2 * H:3 * H] + r * gh[:, 2 * H:3 * H])
        h_new = (1.0 - z) * n + z * h
        if needs_mask:  # only traced when T was padded up to a block multiple
            t_glob = blk * t_block + i
            h_new = jnp.where(t_glob < t_total, h_new, h)
        out_ref[i] = h_new
        return h_new

    h_last = jax.lax.fori_loop(0, t_block, step, h_scr[...], unroll=True)
    h_scr[...] = h_last

    @pl.when(blk == pl.num_programs(0) - 1)
    def _():
        hn_ref[...] = h_last


# --------------------------------------------------------------------------
# Wrapper
# --------------------------------------------------------------------------
def s2s_decoder_forward(x, h0, params, *, time_block=16, row_block=512):
    """x: (T, B, input_size) f32, h0: (1, B, H) f32. Returns (out, h_n, None)."""
    T, B, In = x.shape
    H = h0.shape[-1]
    f32 = jnp.float32

    # Lane / sublane aligned padded sizes.
    B_p = _round_up(B, 8)
    In_p = _round_up(In, 128)
    H_p = _round_up(H, 128)

    # --- pad parameters (per-gate padding keeps gate blocks 128-aligned) ---
    w_l = jnp.pad(params["w_linear"], ((0, In_p - In), (0, H_p - H)))
    b_l = jnp.pad(params["b_linear"], ((0, 0), (0, H_p - H)))

    def pad_gates(w, rows_p):
        # (rows, 3H) -> (rows, 3, H) -> pad -> (rows_p, 3*H_p)
        rows = w.shape[0]
        w3 = w.reshape(rows, 3, H)
        w3 = jnp.pad(w3, ((0, rows_p - rows), (0, 0), (0, H_p - H)))
        return w3.reshape(rows_p, 3 * H_p)

    w_ih = pad_gates(params["w_ih"], H_p)
    b_ih = pad_gates(params["b_ih"], 1)
    w_hh = pad_gates(params["w_hh"], H_p)
    b_hh = pad_gates(params["b_hh"], 1)

    x_p = jnp.pad(x, ((0, 0), (0, B_p - B), (0, In_p - In)))
    h0_p = jnp.pad(h0[0], ((0, B_p - B), (0, H_p - H)))

    # ---------------- stage 1: parallel projection over all timesteps ------
    rows = T * B_p                       # multiple of 8 (B_p is)
    RB = min(rows, row_block)
    rows_p = _round_up(rows, RB)
    x2d = jnp.pad(x_p.reshape(rows, In_p), ((0, rows_p - rows), (0, 0)))

    gi2d = pl.pallas_call(
        _proj_kernel,
        out_shape=jax.ShapeDtypeStruct((rows_p, 3 * H_p), f32),
        grid_spec=pltpu.PrefetchScalarGridSpec(
            num_scalar_prefetch=0,
            grid=(rows_p // RB,),
            in_specs=[
                pl.BlockSpec((RB, In_p), lambda i: (i, 0)),      # x rows
                pl.BlockSpec((In_p, H_p), lambda i: (0, 0)),     # W_linear
                pl.BlockSpec((1, H_p), lambda i: (0, 0)),        # b_linear
                pl.BlockSpec((H_p, 3 * H_p), lambda i: (0, 0)),  # W_ih^T
                pl.BlockSpec((1, 3 * H_p), lambda i: (0, 0)),    # b_ih
            ],
            out_specs=pl.BlockSpec((RB, 3 * H_p), lambda i: (i, 0)),
        ),
        compiler_params=pltpu.CompilerParams(
            dimension_semantics=("parallel",)),
    )(x2d, w_l, b_l, w_ih, b_ih)

    gi3d = gi2d[:rows].reshape(T, B_p, 3 * H_p)

    # ---------------- stage 2: sequential recurrence, TB timesteps / step --
    TB = min(T, time_block)
    T_p = _round_up(T, TB)
    if T_p != T:
        gi3d = jnp.pad(gi3d, ((0, T_p - T), (0, 0), (0, 0)))

    out_p, hn_p = pl.pallas_call(
        functools.partial(_gru_kernel, hidden_p=H_p, t_block=TB, t_total=T,
                          needs_mask=(T_p != T)),
        out_shape=(
            jax.ShapeDtypeStruct((T_p, B_p, H_p), f32),
            jax.ShapeDtypeStruct((B_p, H_p), f32),
        ),
        grid_spec=pltpu.PrefetchScalarGridSpec(
            num_scalar_prefetch=0,
            grid=(T_p // TB,),
            in_specs=[
                pl.BlockSpec((TB, B_p, 3 * H_p), lambda b: (b, 0, 0)),  # gi
                pl.BlockSpec((B_p, H_p), lambda b: (0, 0)),             # h0
                pl.BlockSpec((H_p, 3 * H_p), lambda b: (0, 0)),         # W_hh^T
                pl.BlockSpec((1, 3 * H_p), lambda b: (0, 0)),           # b_hh
            ],
            out_specs=(
                pl.BlockSpec((TB, B_p, H_p), lambda b: (b, 0, 0)),      # outputs
                pl.BlockSpec((B_p, H_p), lambda b: (0, 0)),             # final h
            ),
            scratch_shapes=[pltpu.VMEM((B_p, H_p), f32)],               # carried h
        ),
        compiler_params=pltpu.CompilerParams(
            dimension_semantics=("arbitrary",)),   # sequential recurrence
    )(gi3d, h0_p, w_hh, b_hh)

    out = out_p[:T, :B, :H]
    h_n = hn_p[:B, :H][None]
    return out, h_n, None


# --------------------------------------------------------------------------
# Parameters / reference
# --------------------------------------------------------------------------
def make_params(key, input_size, hidden_size):
    """Deterministic synthetic parameters (shapes match the PyTorch module)."""
    ks = jax.random.split(key, 6)
    H = hidden_size
    scale = 1.0 / jnp.sqrt(jnp.float32(H))
    return {
        # nn.Linear(input_size, hidden) -> stored pre-transposed as (In, H)
        "w_linear": jax.random.normal(ks[0], (input_size, H), jnp.float32) * scale,
        "b_linear": jax.random.normal(ks[1], (1, H), jnp.float32) * scale,
        # nn.GRU weight_ih_l0 is (3H, H); stored transposed as (H, 3H)
        "w_ih": jax.random.normal(ks[2], (H, 3 * H), jnp.float32) * scale,
        "w_hh": jax.random.normal(ks[3], (H, 3 * H), jnp.float32) * scale,
        "b_ih": jax.random.normal(ks[4], (1, 3 * H), jnp.float32) * scale,
        "b_hh": jax.random.normal(ks[5], (1, 3 * H), jnp.float32) * scale,
    }


def ref_forward(x, h0, p):
    """Pure-JAX reference mirroring PyTorch semantics."""
    H = h0.shape[-1]
    act = jnp.maximum(jnp.tanh(x @ p["w_linear"] + p["b_linear"][0]), 0.0)

    def step(h, xt):
        gi = xt @ p["w_ih"] + p["b_ih"][0]
        gh = h @ p["w_hh"] + p["b_hh"][0]
        r = jax.nn.sigmoid(gi[:, :H] + gh[:, :H])
        z = jax.nn.sigmoid(gi[:, H:2 * H] + gh[:, H:2 * H])
        n = jnp.tanh(gi[:, 2 * H:] + r * gh[:, 2 * H:])
        hn = (1.0 - z) * n + z * h
        return hn, hn

    h_last, ys = jax.lax.scan(step, h0[0], act)
    return ys, h_last[None]


if __name__ == "__main__":
    T, B, IN, H = 8, 2, 16, 32  # seq=8, batch=2, input_size=16, hidden=32

    key = jax.random.PRNGKey(0)
    k_x, k_h, k_p = jax.random.split(key, 3)
    x = jax.random.normal(k_x, (T, B, IN), jnp.float32)
    h0 = jax.random.normal(k_h, (1, B, H), jnp.float32)
    params = make_params(k_p, IN, H)

    out, h_n, attw = s2s_decoder_forward(x, h0, params)
    out = jax.block_until_ready(out)
    h_n = jax.block_until_ready(h_n)

    out_ref, h_ref = ref_forward(x, h0, params)
    assert out.shape == (T, B, H) and h_n.shape == (1, B, H) and attw is None
    assert jnp.allclose(out, out_ref, atol=2e-5, rtol=2e-5)
    assert jnp.allclose(h_n, h_ref, atol=2e-5, rtol=2e-5)

    print("KERNEL_OK")
</pallas_src>

<mosaic_0001>
module attributes {stable_mosaic.version = 11 : i64} {
  func.func @_proj_kernel(%arg0: i32, %arg1: memref<64x128xf32, #tpu.memory_space<vmem>>, %arg2: memref<128x128xf32, #tpu.memory_space<vmem>>, %arg3: memref<1x128xf32, #tpu.memory_space<vmem>>, %arg4: memref<128x384xf32, #tpu.memory_space<vmem>>, %arg5: memref<1x384xf32, #tpu.memory_space<vmem>>, %arg6: memref<64x384xf32, #tpu.memory_space<vmem>>) attributes {dimension_semantics = [#tpu.dimension_semantics<parallel>], iteration_bounds = array<i64: 1>, scalar_prefetch = 0 : i64, scratch_operands = 0 : i64, tpu.core_type = #tpu.core_type<tc>, window_params = [{transform_indices = @transform_0, window_bounds = array<i64: 64, 128>}, {pipeline_mode = #tpu.pipeline_mode<synchronous>, transform_indices = @transform_1, window_bounds = array<i64: 128, 128>}, {pipeline_mode = #tpu.pipeline_mode<synchronous>, transform_indices = @transform_2, window_bounds = array<i64: 1, 128>}, {pipeline_mode = #tpu.pipeline_mode<synchronous>, transform_indices = @transform_3, window_bounds = array<i64: 128, 384>}, {pipeline_mode = #tpu.pipeline_mode<synchronous>, transform_indices = @transform_4, window_bounds = array<i64: 1, 384>}, {transform_indices = @transform_5, window_bounds = array<i64: 64, 384>}]} {
    %c0 = arith.constant 0 : index
    %c0_0 = arith.constant 0 : index
    %0 = vector.load %arg1[%c0, %c0_0] : memref<64x128xf32, #tpu.memory_space<vmem>>, vector<64x128xf32>
    %c0_1 = arith.constant 0 : index
    %c0_2 = arith.constant 0 : index
    %1 = vector.load %arg2[%c0_1, %c0_2] : memref<128x128xf32, #tpu.memory_space<vmem>>, vector<128x128xf32>
    %cst = arith.constant dense<0.000000e+00> : vector<64x128xf32>
    %2 = tpu.matmul %0, %1, %cst {dimension_numbers = #tpu.dot_dimension_numbers<[1], [0], [0], [1], [0, 0, 1, 1], [], []>} : vector<64x128xf32>, vector<128x128xf32>, vector<64x128xf32> -> vector<64x128xf32>
    %c0_3 = arith.constant 0 : index
    %c0_4 = arith.constant 0 : index
    %3 = vector.load %arg3[%c0_3, %c0_4] : memref<1x128xf32, #tpu.memory_space<vmem>>, vector<1x128xf32>
    %4 = vector.broadcast %3 : vector<1x128xf32> to vector<64x128xf32>
    %5 = arith.addf %2, %4 : vector<64x128xf32>
    %6 = math.tanh %5 : vector<64x128xf32>
    %cst_5 = arith.constant 0.000000e+00 : f32
    %7 = vector.broadcast %cst_5 : f32 to vector<64x128xf32>
    %8 = arith.maximumf %6, %7 : vector<64x128xf32>
    %c0_6 = arith.constant 0 : index
    %c0_7 = arith.constant 0 : index
    %9 = vector.load %arg4[%c0_6, %c0_7] : memref<128x384xf32, #tpu.memory_space<vmem>>, vector<128x384xf32>
    %cst_8 = arith.constant dense<0.000000e+00> : vector<64x384xf32>
    %10 = tpu.matmul %8, %9, %cst_8 {dimension_numbers = #tpu.dot_dimension_numbers<[1], [0], [0], [1], [0, 0, 1, 1], [], []>} : vector<64x128xf32>, vector<128x384xf32>, vector<64x384xf32> -> vector<64x384xf32>
    %c0_9 = arith.constant 0 : index
    %c0_10 = arith.constant 0 : index
    %11 = vector.load %arg5[%c0_9, %c0_10] : memref<1x384xf32, #tpu.memory_space<vmem>>, vector<1x384xf32>
    %12 = vector.broadcast %11 : vector<1x384xf32> to vector<64x384xf32>
    %13 = arith.addf %10, %12 : vector<64x384xf32>
    %c0_11 = arith.constant 0 : index
    %c0_12 = arith.constant 0 : index
    %14 = vector.load %arg6[%c0_11, %c0_12] : memref<64x384xf32, #tpu.memory_space<vmem>>, vector<64x384xf32>
    tpu.vector_store %arg6[%c0_11, %c0_12], %13 {strides = array<i32>} : memref<64x384xf32, #tpu.memory_space<vmem>>, vector<64x384xf32>,
    return
  }
  func.func @transform_0(%arg0: i32) -> (i32, i32) {
    %c0_i32 = arith.constant 0 : i32
    %c0_i32_0 = arith.constant 0 : i32
    return %arg0, %c0_i32 : i32, i32
  }
  func.func @transform_1(%arg0: i32) -> (i32, i32) {
    %c0_i32 = arith.constant 0 : i32
    %c0_i32_0 = arith.constant 0 : i32
    %c0_i32_1 = arith.constant 0 : i32
    return %c0_i32, %c0_i32_0 : i32, i32
  }
  func.func @transform_2(%arg0: i32) -> (i32, i32) {
    %c0_i32 = arith.constant 0 : i32
    %c0_i32_0 = arith.constant 0 : i32
    %c0_i32_1 = arith.constant 0 : i32
    return %c0_i32, %c0_i32_0 : i32, i32
  }
  func.func @transform_3(%arg0: i32) -> (i32, i32) {
    %c0_i32 = arith.constant 0 : i32
    %c0_i32_0 = arith.constant 0 : i32
    %c0_i32_1 = arith.constant 0 : i32
    return %c0_i32, %c0_i32_0 : i32, i32
  }
  func.func @transform_4(%arg0: i32) -> (i32, i32) {
    %c0_i32 = arith.constant 0 : i32
    %c0_i32_0 = arith.constant 0 : i32
    %c0_i32_1 = arith.constant 0 : i32
    return %c0_i32, %c0_i32_0 : i32, i32
  }
  func.func @transform_5(%arg0: i32) -> (i32, i32) {
    %c0_i32 = arith.constant 0 : i32
    %c0_i32_0 = arith.constant 0 : i32
    return %arg0, %c0_i32 : i32, i32
  }
}

</mosaic_0001>

<bundles_post_ra>
// kernel: tpu_custom_call.1
= control target key start
LH: loop header
LB: loop body
LE: loop exit
PB: predicated region body
PF: predicated region fallthrough
CT: control target
= control target key end

     0   :  { %10 = vsyncpa [#allocation3], 0  ;;  %s638_s0 = inlined_call_operand.hbm [shape: f32[64,128], index: 0, kind: input, shape index: {}]   ;;  %s639_s1 = inlined_call_operand.hbm [shape: f32[128,128], index: 1, kind: input, shape index: {}]   ;;  %s640_s2 = inlined_call_operand.hbm [shape: f32[1,128], index: 2, kind: input, shape index: {}]   ;;  %s641_s3 = inlined_call_operand.hbm [shape: f32[128,384], index: 3, kind: input, shape index: {}]   ;;  %s642_s4 = inlined_call_operand.vmem [shape: f32[1,384], index: 4, kind: input, shape index: {}]   ;;  %s643_s5 = inlined_call_operand.hbm [shape: f32[64,384], index: 5, kind: output, shape index: {}]  }
   0x1   :  { %11 = vsyncpa [#allocation6], 0 }
   0x2   :  { %12 = vsyncpa [#allocation9], 0 }
   0x3   :  { %13 = vsyncpa [#allocation4], 0  ;;  %s31_s20 = sshll.u32 %s639_s1, 4  ;;  %s545_s21 = smov [#allocation5]   ;;  %s32_s20 = int_to_ptr.hbm [resolvable:$true] %s31_s20 }
   0x4   :  { %s33_s22 = sshll.u32 %s545_s21, 4  ;;  %s18_s25 = sshll.u32 %s638_s0, 4  ;;  %s34_s22 = int_to_ptr.vmem [resolvable:$true] %s33_s22  ;;  %s19_s25 = int_to_ptr.hbm [resolvable:$true] %s18_s25 }
   0x5   :  { %s546_s26 = smov 128   ;;  %s547_s27 = smov 8  }
   0x6   :  { %39 = dma.hbm_to_vmem [thread:$0]  %s32_s20, 2048, %s34_s22, [#allocation6], %s546_s26, %s546_s26, %s547_s27  }
   0x7   :  { %s548_s28 = smov [#allocation2]   ;;  %s45_s7 = sshll.u32 %s640_s2, 4  ;;  %s46_s7 = int_to_ptr.hbm [resolvable:$true] %s45_s7 }
   0x8   :  { %s20_s29 = sshll.u32 %s548_s28, 4  ;;  %s55_s9 = sshll.u32 %s641_s3, 4  ;;  %s21_s29 = int_to_ptr.vmem [resolvable:$true] %s20_s29  ;;  %s56_s9 = int_to_ptr.hbm [resolvable:$true] %s55_s9 }
   0x9   :  { %26 = dma.hbm_to_vmem [thread:$0]  %s19_s25, 1024, %s21_s29, [#allocation3], %s546_s26, %s546_s26, %s547_s27  }
   0xa   :  { %s549_s10 = smov [#allocation7]   ;;  %s550_s0 = smov [#allocation8]  }
   0xb   :  { %s47_s11 = sshll.u32 %s549_s10, 4  ;;  %s57_s12 = sshll.u32 %s550_s0, 4  ;;  %s48_s11 = int_to_ptr.vmem [resolvable:$true] %s47_s11  ;;  %s58_s12 = int_to_ptr.vmem [resolvable:$true] %s57_s12 }
   0xc   :  { %50 = dma.hbm_to_vmem [thread:$0]  %s46_s7, 16, %s48_s11, [#allocation6]  }
   0xd   :  { %s551_s13 = smov 384   ;;  %s552_s14 = smov 24  }
   0xe   :  { %63 = dma.hbm_to_vmem [thread:$0]  %s56_s9, 6144, %s58_s12, [#allocation9], %s551_s13, %s551_s13, %s552_s14  }
   0xf   :  { %537 = dma.done.wait [#allocation3], 1024  }
  0x10   :  { %538 = vsyncadd [#allocation3], 4294966272 }
  0x11   :  { %539 = dma.done.wait [#allocation6], 2064  }
  0x12   :  { %540 = vsyncadd [#allocation6], 4294965232 }
  0x13   :  { %541 = dma.done.wait [#allocation9], 6144  }
  0x14   :  { %542 = vsyncadd [#allocation9], 4294961152  ;;  %v105_v0 = vld [vmem:[#allocation5 + $0x78] sm:$0xff]  ;;  %v104_v1 = vld [vmem:[#allocation5 + $0x70] sm:$0xff]  ;;  %s376_s18 = sshll.u32 %s643_s5, 4  ;;  %s377_s18 = int_to_ptr.hbm [resolvable:$true] %s376_s18 }
  0x15   :  { %110 = vmatpush.msra.mxu0 %v105_v0  ;;  %v103_v2 = vld [vmem:[#allocation5 + $0x68] sm:$0xff]  ;;  %v102_v3 = vld [vmem:[#allocation5 + $0x60] sm:$0xff]  ;;  %v101_v4 = vld [vmem:[#allocation5 + $0x58] sm:$0xff] }
  0x16   :  { %v100_v5 = vld [vmem:[#allocation5 + $0x50] sm:$0xff]  ;;  %v99_v6 = vld [vmem:[#allocation5 + $0x48] sm:$0xff]  ;;  %v98_v7 = vld [vmem:[#allocation5 + $0x40] sm:$0xff] }
  0x17   :  { %111 = vmatpush.msra.mxu0 %v104_v1  ;;  %v97_v8 = vld [vmem:[#allocation5 + $0x38] sm:$0xff]  ;;  %v96_v9 = vld [vmem:[#allocation5 + $0x30] sm:$0xff]  ;;  %v95_v10 = vld [vmem:[#allocation5 + $0x28] sm:$0xff] }
  0x18   :  { %v94_v11 = vld [vmem:[#allocation5 + $0x20] sm:$0xff]  ;;  %v93_v12 = vld [vmem:[#allocation5 + $0x18] sm:$0xff]  ;;  %v92_v13 = vld [vmem:[#allocation5 + $0x10] sm:$0xff] }
  0x19   :  { %112 = vmatpush.msra.mxu0 %v103_v2  ;;  %v91_v14 = vld [vmem:[#allocation5 + $0x8] sm:$0xff]  ;;  %v90_v15 = vld [vmem:[#allocation5] sm:$0xff]  ;;  %v84_v18 = vld [vmem:[#allocation2 + $0x10] sm:$0xff] }
  0x1a   :  { %v82_v16 = vld [vmem:[#allocation2] sm:$0xff]  ;;  %v83_v17 = vld [vmem:[#allocation2 + $0x8] sm:$0xff]  ;;  %v85_v19 = vld [vmem:[#allocation2 + $0x18] sm:$0xff] }
  0x1b   :  { %113 = vmatpush.msra.mxu0 %v102_v3  ;;  %v212_v20 = vld [vmem:[#allocation8 + $0x168] sm:$0xff]  ;;  %v213_v21 = vld [vmem:[#allocation8 + $0x170] sm:$0xff]  ;;  %v214_v22 = vld [vmem:[#allocation8 + $0x178] sm:$0xff] }
  0x1c   :  { %223 = vmatpush.msra.mxu1 %v212_v20  ;;  %264 = vmatpush.msra.mxu2 %v213_v21  ;;  %v209_v23 = vld [vmem:[#allocation8 + $0x150] sm:$0xff]  ;;  %v210_v24 = vld [vmem:[#allocation8 + $0x158] sm:$0xff]  ;;  %v211_v25 = vld [vmem:[#allocation8 + $0x160] sm:$0xff] }
  0x1d   :  { %114 = vmatpush.msra.mxu0 %v101_v4  ;;  %305 = vmatpush.msra.mxu3 %v214_v22  ;;  %v206_v26 = vld [vmem:[#allocation8 + $0x138] sm:$0xff]  ;;  %v207_v27 = vld [vmem:[#allocation8 + $0x140] sm:$0xff]  ;;  %v208_v28 = vld [vmem:[#allocation8 + $0x148] sm:$0xff] }
  0x1e   :  { %224 = vmatpush.msra.mxu1 %v209_v23  ;;  %265 = vmatpush.msra.mxu2 %v210_v24  ;;  %v203_v29 = vld [vmem:[#allocation8 + $0x120] sm:$0xff]  ;;  %v204_v30 = vld [vmem:[#allocation8 + $0x128] sm:$0xff]  ;;  %v205_v32 = vld [vmem:[#allocation8 + $0x130] sm:$0xff] }
  0x1f   :  { %115 = vmatpush.msra.mxu0 %v100_v5  ;;  %306 = vmatpush.msra.mxu3 %v211_v25  ;;  %v86_v31 = vld [vmem:[#allocation2 + $0x20] sm:$0xff]  ;;  %v200_v33 = vld [vmem:[#allocation8 + $0x108] sm:$0xff]  ;;  %v201_v34 = vld [vmem:[#allocation8 + $0x110] sm:$0xff] }
  0x20   :  { %225 = vmatpush.msra.mxu1 %v206_v26  ;;  %266 = vmatpush.msra.mxu2 %v207_v27  ;;  %v202_v35 = vld [vmem:[#allocation8 + $0x118] sm:$0xff]  ;;  %v197_v36 = vld [vmem:[#allocation8 + $0xf0] sm:$0xff]  ;;  %v199_v38 = vld [vmem:[#allocation8 + $0x100] sm:$0xff] }
  0x21   :  { %116 = vmatpush.msra.mxu0 %v99_v6  ;;  %307 = vmatpush.msra.mxu3 %v208_v28  ;;  %v198_v37 = vld [vmem:[#allocation8 + $0xf8] sm:$0xff]  ;;  %v195_v40 = vld [vmem:[#allocation8 + $0xe0] sm:$0xff]  ;;  %v196_v41 = vld [vmem:[#allocation8 + $0xe8] sm:$0xff] }
  0x22   :  { %226 = vmatpush.msra.mxu1 %v203_v29  ;;  %267 = vmatpush.msra.mxu2 %v204_v30  ;;  %v194_v39 = vld [vmem:[#allocation8 + $0xd8] sm:$0xff]  ;;  %v191_v42 = vld [vmem:[#allocation8 + $0xc0] sm:$0xff]  ;;  %v192_v43 = vld [vmem:[#allocation8 + $0xc8] sm:$0xff] }
  0x23   :  { %117 = vmatpush.msra.mxu0 %v98_v7  ;;  %308 = vmatpush.msra.mxu3 %v205_v32  ;;  %v87_v44 = vld [vmem:[#allocation2 + $0x28] sm:$0xff]  ;;  %v193_v45 = vld [vmem:[#allocation8 + $0xd0] sm:$0xff]  ;;  %v190_v48 = vld [vmem:[#allocation8 + $0xb8] sm:$0xff] }
  0x24   :  { %227 = vmatpush.msra.mxu1 %v200_v33  ;;  %268 = vmatpush.msra.mxu2 %v201_v34  ;;  %v188_v46 = vld [vmem:[#allocation8 + $0xa8] sm:$0xff]  ;;  %v189_v47 = vld [vmem:[#allocation8 + $0xb0] sm:$0xff]  ;;  %v186_v50 = vld [vmem:[#allocation8 + $0x98] sm:$0xff] }
  0x25   :  { %118 = vmatpush.msra.mxu0 %v97_v8  ;;  %309 = vmatpush.msra.mxu3 %v202_v35  ;;  %v185_v49 = vld [vmem:[#allocation8 + $0x90] sm:$0xff]  ;;  %v187_v51 = vld [vmem:[#allocation8 + $0xa0] sm:$0xff]  ;;  %v182_v54 = vld [vmem:[#allocation8 + $0x78] sm:$0xff] }
  0x26   :  { %228 = vmatpush.msra.mxu1 %v197_v36  ;;  %269 = vmatpush.msra.mxu2 %v198_v37  ;;  %v88_v52 = vld [vmem:[#allocation2 + $0x30] sm:$0xff]  ;;  %v89_v53 = vld [vmem:[#allocation2 + $0x38] sm:$0xff]  ;;  %v183_v55 = vld [vmem:[#allocation8 + $0x80] sm:$0xff] }
  0x27   :  { %119 = vmatpush.msra.mxu0 %v96_v9  ;;  %310 = vmatpush.msra.mxu3 %v199_v38  ;;  %v184_v56 = vld [vmem:[#allocation8 + $0x88] sm:$0xff]  ;;  %v179_v57 = vld [vmem:[#allocation8 + $0x60] sm:$0xff]  ;;  %v181_v59 = vld [vmem:[#allocation8 + $0x70] sm:$0xff] }
  0x28   :  { %229 = vmatpush.msra.mxu1 %v194_v39  ;;  %270 = vmatpush.msra.mxu2 %v195_v40  ;;  %v180_v58 = vld [vmem:[#allocation8 + $0x68] sm:$0xff]  ;;  %v177_v61 = vld [vmem:[#allocation8 + $0x50] sm:$0xff]  ;;  %v178_v62 = vld [vmem:[#allocation8 + $0x58] sm:$0xff] }
  0x29   :  { %120 = vmatpush.msra.mxu0 %v95_v10  ;;  %311 = vmatpush.msra.mxu3 %v196_v41  ;;  %v176_v60 = vld [vmem:[#allocation8 + $0x48] sm:$0xff]  ;;  %v173_v63 = vld [vmem:[#allocation8 + $0x30] sm:$0xff]  ;;  %v174_v0 = vld [vmem:[#allocation8 + $0x38] sm:$0xff] }
  0x2a   :  { %230 = vmatpush.msra.mxu1 %v191_v42  ;;  %271 = vmatpush.msra.mxu2 %v192_v43  ;;  %v175_v1 = vld [vmem:[#allocation8 + $0x40] sm:$0xff]  ;;  %v170_v2 = vld [vmem:[#allocation8 + $0x18] sm:$0xff]  ;;  %v172_v4 = vld [vmem:[#allocation8 + $0x28] sm:$0xff] }
  0x2b   :  { %121 = vmatpush.msra.mxu0 %v94_v11  ;;  %312 = vmatpush.msra.mxu3 %v193_v45  ;;  %v171_v3 = vld [vmem:[#allocation8 + $0x20] sm:$0xff]  ;;  %v168_v6 = vld [vmem:[#allocation8 + $0x8] sm:$0xff]  ;;  %v169_v7 = vld [vmem:[#allocation8 + $0x10] sm:$0xff] }
  0x2c   :  { %231 = vmatpush.msra.mxu1 %v188_v46  ;;  %272 = vmatpush.msra.mxu2 %v189_v47  ;;  %v167_v5 = vld [vmem:[#allocation8] sm:$0xff]  ;;  %v400_v8 = vld [vmem:[#allocation7] ss:$0 sm:$0xff] }
  0x2d   :  { %122 = vmatpush.msra.mxu0 %v93_v12  ;;  %313 = vmatpush.msra.mxu3 %v190_v48  ;;  %v215_v41 = vld [vmem:[%s642_s4] sm:$0x7]  ;;  %s553_s4 = smov [#allocation10]  }
  0x2e   :  { %232 = vmatpush.msra.mxu1 %v185_v49  ;;  %273 = vmatpush.msra.mxu2 %v186_v50  ;;  %v602_v42 = vperm.slane %v215_v41, 0  ;;  %v605_v45 = vperm.slane %v215_v41, 1  ;;  %v607_v46 = vperm.slane %v215_v41, 2  ;;  %s374_s15 = sshll.u32 %s553_s4, 4  ;;  %s375_s15 = int_to_ptr.vmem [resolvable:$true] %s374_s15 }
  0x2f   :  { %123 = vmatpush.msra.mxu0 %v92_v13  ;;  %314 = vmatpush.msra.mxu3 %v187_v51 }
  0x30   :  { %233 = vmatpush.msra.mxu1 %v182_v54  ;;  %274 = vmatpush.msra.mxu2 %v183_v55 }
  0x31   :  { %124 = vmatpush.msra.mxu0 %v91_v14  ;;  %315 = vmatpush.msra.mxu3 %v184_v56 }
  0x32   :  { %234 = vmatpush.msra.mxu1 %v179_v57  ;;  %275 = vmatpush.msra.mxu2 %v180_v58 }
  0x33   :  { %125 = vmatpush.msra.mxu0 %v90_v15  ;;  %316 = vmatpush.msra.mxu3 %v181_v59 }
  0x34   :  { %126 = vmatmul.f32.vlgmr.msra.gmra.mxu0 %v82_v16  ;;  %235 = vmatpush.msra.mxu1 %v176_v60 }
  0x35   :  { %276 = vmatpush.msra.mxu2 %v177_v61  ;;  %317 = vmatpush.msra.mxu3 %v178_v62 }
  0x36   :  { %236 = vmatpush.msra.mxu1 %v173_v63 }
  0x37   :  { %277 = vmatpush.msra.mxu2 %v174_v0  ;;  %318 = vmatpush.msra.mxu3 %v175_v1 }
  0x38   :  { %237 = vmatpush.msra.mxu1 %v170_v2 }
  0x39   :  { %278 = vmatpush.msra.mxu2 %v171_v3  ;;  %319 = vmatpush.msra.mxu3 %v172_v4 }
  0x3a   :  { %238 = vmatpush.msra.mxu1 %v167_v5 }
  0x3b   :  { %279 = vmatpush.msra.mxu2 %v168_v6  ;;  %320 = vmatpush.msra.mxu3 %v169_v7 }
  0x3c   :  { %129 = vmatmul.f32.gmra.mxu0 %v83_v17 }
  0x44   :  { %132 = vmatmul.f32.gmra.mxu0 %v84_v18 }
  0x4c   :  { %135 = vmatmul.f32.gmra.mxu0 %v85_v19 }
  0x54   :  { %138 = vmatmul.f32.gmra.mxu0 %v86_v31 }
  0x5c   :  { %141 = vmatmul.f32.gmra.mxu0 %v87_v44 }
  0x64   :  { %144 = vmatmul.f32.gmra.mxu0 %v88_v52 }
  0x6c   :  { %147 = vmatmul.f32.gmra.mxu0 %v89_v53 }
  0xb1   :  { %v127_v9 = vpop.f32.mrf.mxu0 }
  0xb2   :  { %v128_v10 = vadd.f32 %v400_v8, %v127_v9 }
  0xb4   :  { %401 = vtanh.f32 %v128_v10 }
  0xb9   :  { %v130_v11 = vpop.f32.mrf.mxu0 }
  0xba   :  { %v402_v12 = vpop.eup %401  ;;  %v131_v13 = vadd.f32 %v400_v8, %v130_v11 }
  0xbb   :  { %v159_v14 = vmax.f32 %v402_v12, 0.0 }
  0xbc   :  { %403 = vtanh.f32 %v131_v13 }
  0xbd   :  { %239 = vmatmul.f32.vlgmr.msra.gmra.mxu1 %v159_v14  ;;  %280 = vmatmul.f32.vlgmr.msra.gmra.mxu2 %v159_v14 }
  0xbe   :  { %321 = vmatmul.f32.vlgmr.msra.gmra.mxu3 %v159_v14 }
  0xc1   :  { %v133_v15 = vpop.f32.mrf.mxu0 }
  0xc2   :  { %v404_v16 = vpop.eup %403  ;;  %v134_v17 = vadd.f32 %v400_v8, %v133_v15 }
  0xc3   :  { %v160_v18 = vmax.f32 %v404_v16, 0.0 }
  0xc4   :  { %405 = vtanh.f32 %v134_v17 }
  0xc5   :  { %242 = vmatmul.f32.gmra.mxu1 %v160_v18  ;;  %283 = vmatmul.f32.gmra.mxu2 %v160_v18 }
  0xc6   :  { %324 = vmatmul.f32.gmra.mxu3 %v160_v18 }
  0xc9   :  { %v136_v19 = vpop.f32.mrf.mxu0 }
  0xca   :  { %v406_v20 = vpop.eup %405  ;;  %v137_v21 = vadd.f32 %v400_v8, %v136_v19 }
  0xcb   :  { %v161_v22 = vmax.f32 %v406_v20, 0.0 }
  0xcc   :  { %407 = vtanh.f32 %v137_v21 }
  0xcd   :  { %245 = vmatmul.f32.gmra.mxu1 %v161_v22  ;;  %286 = vmatmul.f32.gmra.mxu2 %v161_v22 }
  0xce   :  { %327 = vmatmul.f32.gmra.mxu3 %v161_v22 }
  0xd1   :  { %v139_v23 = vpop.f32.mrf.mxu0 }
  0xd2   :  { %v408_v24 = vpop.eup %407  ;;  %v140_v25 = vadd.f32 %v400_v8, %v139_v23 }
  0xd3   :  { %v162_v26 = vmax.f32 %v408_v24, 0.0 }
  0xd4   :  { %409 = vtanh.f32 %v140_v25 }
  0xd5   :  { %248 = vmatmul.f32.gmra.mxu1 %v162_v26  ;;  %289 = vmatmul.f32.gmra.mxu2 %v162_v26 }
  0xd6   :  { %330 = vmatmul.f32.gmra.mxu3 %v162_v26 }
  0xd9   :  { %v142_v27 = vpop.f32.mrf.mxu0 }
  0xda   :  { %v410_v28 = vpop.eup %409  ;;  %v143_v29 = vadd.f32 %v400_v8, %v142_v27 }
  0xdb   :  { %v163_v30 = vmax.f32 %v410_v28, 0.0 }
  0xdc   :  { %411 = vtanh.f32 %v143_v29 }
  0xdd   :  { %251 = vmatmul.f32.gmra.mxu1 %v163_v30  ;;  %292 = vmatmul.f32.gmra.mxu2 %v163_v30 }
  0xde   :  { %333 = vmatmul.f32.gmra.mxu3 %v163_v30 }
  0xe1   :  { %v145_v31 = vpop.f32.mrf.mxu0 }
  0xe2   :  { %v412_v32 = vpop.eup %411  ;;  %v146_v33 = vadd.f32 %v400_v8, %v145_v31 }
  0xe3   :  { %v164_v34 = vmax.f32 %v412_v32, 0.0 }
  0xe4   :  { %413 = vtanh.f32 %v146_v33 }
  0xe5   :  { %254 = vmatmul.f32.gmra.mxu1 %v164_v34  ;;  %295 = vmatmul.f32.gmra.mxu2 %v164_v34 }
  0xe6   :  { %336 = vmatmul.f32.gmra.mxu3 %v164_v34 }
  0xe9   :  { %v148_v35 = vpop.f32.mrf.mxu0 }
  0xea   :  { %v414_v36 = vpop.eup %413  ;;  %v149_v37 = vadd.f32 %v400_v8, %v148_v35 }
  0xeb   :  { %v165_v38 = vmax.f32 %v414_v36, 0.0 }
  0xec   :  { %415 = vtanh.f32 %v149_v37 }
  0xed   :  { %257 = vmatmul.f32.gmra.mxu1 %v165_v38  ;;  %298 = vmatmul.f32.gmra.mxu2 %v165_v38 }
  0xee   :  { %339 = vmatmul.f32.gmra.mxu3 %v165_v38 }
  0xf2   :  { %v416_v39 = vpop.eup %415 }
  0xf3   :  { %v166_v40 = vmax.f32 %v416_v39, 0.0 }
  0xf5   :  { %260 = vmatmul.f32.gmra.mxu1 %v166_v40  ;;  %301 = vmatmul.f32.gmra.mxu2 %v166_v40 }
  0xf6   :  { %342 = vmatmul.f32.gmra.mxu3 %v166_v40 }
 0x13a   :  { %v240_v43 = vpop.f32.mrf.mxu1 }
 0x13b   :  { %v241_v44 = vadd.f32 %v240_v43, %v602_v42 }
 0x13d   :  { %346 = vst [vmem:[#allocation10] sm:$0xff] %v241_v44 }
 0x140   :  { %v281_v47 = vpop.f32.mrf.mxu2 }
 0x141   :  { %v282_v48 = vadd.f32 %v281_v47, %v605_v45  ;;  %v322_v49 = vpop.f32.mrf.mxu3 }
 0x142   :  { %v323_v50 = vadd.f32 %v322_v49, %v607_v46  ;;  %v243_v51 = vpop.f32.mrf.mxu1 }
 0x143   :  { %347 = vst [vmem:[#allocation10 + $0x8] sm:$0xff] %v282_v48  ;;  %v244_v52 = vadd.f32 %v243_v51, %v602_v42 }
 0x144   :  { %348 = vst [vmem:[#allocation10 + $0x10] sm:$0xff] %v323_v50 }
 0x145   :  { %349 = vst [vmem:[#allocation10 + $0x18] sm:$0xff] %v244_v52 }
 0x148   :  { %v284_v53 = vpop.f32.mrf.mxu2 }
 0x149   :  { %v285_v54 = vadd.f32 %v284_v53, %v605_v45  ;;  %v325_v55 = vpop.f32.mrf.mxu3 }
 0x14a   :  { %v326_v56 = vadd.f32 %v325_v55, %v607_v46  ;;  %v246_v57 = vpop.f32.mrf.mxu1 }
 0x14b   :  { %350 = vst [vmem:[#allocation10 + $0x20] sm:$0xff] %v285_v54  ;;  %v247_v58 = vadd.f32 %v246_v57, %v602_v42 }
 0x14c   :  { %351 = vst [vmem:[#allocation10 + $0x28] sm:$0xff] %v326_v56 }
 0x14d   :  { %352 = vst [vmem:[#allocation10 + $0x30] sm:$0xff] %v247_v58 }
 0x150   :  { %v287_v59 = vpop.f32.mrf.mxu2 }
 0x151   :  { %v288_v60 = vadd.f32 %v287_v59, %v605_v45  ;;  %v328_v61 = vpop.f32.mrf.mxu3 }
 0x152   :  { %v329_v62 = vadd.f32 %v328_v61, %v607_v46  ;;  %v249_v63 = vpop.f32.mrf.mxu1 }
 0x153   :  { %353 = vst [vmem:[#allocation10 + $0x38] sm:$0xff] %v288_v60  ;;  %v250_v0 = vadd.f32 %v249_v63, %v602_v42 }
 0x154   :  { %354 = vst [vmem:[#allocation10 + $0x40] sm:$0xff] %v329_v62 }
 0x155   :  { %355 = vst [vmem:[#allocation10 + $0x48] sm:$0xff] %v250_v0 }
 0x158   :  { %v290_v1 = vpop.f32.mrf.mxu2 }
 0x159   :  { %v291_v2 = vadd.f32 %v290_v1, %v605_v45  ;;  %v331_v3 = vpop.f32.mrf.mxu3 }
 0x15a   :  { %v332_v4 = vadd.f32 %v331_v3, %v607_v46  ;;  %v252_v5 = vpop.f32.mrf.mxu1 }
 0x15b   :  { %356 = vst [vmem:[#allocation10 + $0x50] sm:$0xff] %v291_v2  ;;  %v253_v6 = vadd.f32 %v252_v5, %v602_v42 }
 0x15c   :  { %357 = vst [vmem:[#allocation10 + $0x58] sm:$0xff] %v332_v4 }
 0x15d   :  { %358 = vst [vmem:[#allocation10 + $0x60] sm:$0xff] %v253_v6 }
 0x160   :  { %v293_v7 = vpop.f32.mrf.mxu2 }
 0x161   :  { %v294_v8 = vadd.f32 %v293_v7, %v605_v45  ;;  %v334_v9 = vpop.f32.mrf.mxu3 }
 0x162   :  { %v335_v10 = vadd.f32 %v334_v9, %v607_v46  ;;  %v255_v11 = vpop.f32.mrf.mxu1 }
 0x163   :  { %359 = vst [vmem:[#allocation10 + $0x68] sm:$0xff] %v294_v8  ;;  %v256_v12 = vadd.f32 %v255_v11, %v602_v42 }
 0x164   :  { %360 = vst [vmem:[#allocation10 + $0x70] sm:$0xff] %v335_v10 }
 0x165   :  { %361 = vst [vmem:[#allocation10 + $0x78] sm:$0xff] %v256_v12 }
 0x168   :  { %v296_v13 = vpop.f32.mrf.mxu2 }
 0x169   :  { %v297_v14 = vadd.f32 %v296_v13, %v605_v45  ;;  %v337_v15 = vpop.f32.mrf.mxu3 }
 0x16a   :  { %v338_v16 = vadd.f32 %v337_v15, %v607_v46  ;;  %v258_v17 = vpop.f32.mrf.mxu1 }
 0x16b   :  { %362 = vst [vmem:[#allocation10 + $0x80] sm:$0xff] %v297_v14  ;;  %v259_v18 = vadd.f32 %v258_v17, %v602_v42 }
 0x16c   :  { %363 = vst [vmem:[#allocation10 + $0x88] sm:$0xff] %v338_v16 }
 0x16d   :  { %364 = vst [vmem:[#allocation10 + $0x90] sm:$0xff] %v259_v18 }
 0x170   :  { %v299_v19 = vpop.f32.mrf.mxu2 }
 0x171   :  { %v300_v20 = vadd.f32 %v299_v19, %v605_v45  ;;  %v340_v21 = vpop.f32.mrf.mxu3 }
 0x172   :  { %v341_v22 = vadd.f32 %v340_v21, %v607_v46  ;;  %v261_v23 = vpop.f32.mrf.mxu1 }
 0x173   :  { %365 = vst [vmem:[#allocation10 + $0x98] sm:$0xff] %v300_v20  ;;  %v262_v24 = vadd.f32 %v261_v23, %v602_v42 }
 0x174   :  { %366 = vst [vmem:[#allocation10 + $0xa0] sm:$0xff] %v341_v22 }
 0x175   :  { %367 = vst [vmem:[#allocation10 + $0xa8] sm:$0xff] %v262_v24 }
 0x178   :  { %v302_v25 = vpop.f32.mrf.mxu2 }
 0x179   :  { %v303_v26 = vadd.f32 %v302_v25, %v605_v45  ;;  %v343_v27 = vpop.f32.mrf.mxu3 }
 0x17a   :  { %v344_v28 = vadd.f32 %v343_v27, %v607_v46 }
 0x17b   :  { %368 = vst [vmem:[#allocation10 + $0xb0] sm:$0xff] %v303_v26 }
 0x17c   :  { %369 = vst [vmem:[#allocation10 + $0xb8] sm:$0xff] %v344_v28 }
 0x17d   :  { %382 = dma.vmem_to_hbm [thread:$0]  %s375_s15, 3072, %s377_s18, [#allocation4], %s551_s13, %s551_s13, %s552_s14  }
 0x17e   :  { %543 = dma.done.wait [#allocation4], 3072  }
 0x17f   :  { %544 = vsyncadd [#allocation4], 4294964224 }
 0x180   :  { %387 = vsyncpa [#allocation3], 1 }
 0x181   :  { %388 = vsyncpa [#allocation6], 1 }
 0x182   :  { %389 = vsyncpa [#allocation9], 1 }
 0x183   :  { %390 = vsyncpa [#allocation4], 1 }

</bundles_post_ra>
